<compile_context>
chip_gen: v7x
topology: tpu7x:2x2x1
jax: 0.10.0
libtpu: 0.0.40
codegen_flags: <defaults>
</compile_context>

<pallas_src>
import jax
import jax.numpy as jnp
from jax.experimental import pallas as pl
from jax.experimental.pallas import tpu as pltpu


# ----------------------------------------------------------------------------
# Main kernel: per-graph 2x HeteroGraphConv (+ReLU) + readout + classifier logits
# ----------------------------------------------------------------------------
def make_rgcn_kernel(rel_list, ntypes, n_nodes, hidden_dim):
    n_rel = len(rel_list)
    n_nt = len(ntypes)
    nt_index = {nt: i for i, nt in enumerate(ntypes)}
    # relations grouped by destination ntype (drives the fused-K GEMM layout)
    rels_to = [[r for r, (_, _, d) in enumerate(rel_list) if nt_index[d] == t]
               for t in range(n_nt)]
    recv = [t for t in range(n_nt) if rels_to[t]]      # ntypes receiving >= 1 relation
    recv_pos = {t: i for i, t in enumerate(recv)}
    n_recv = len(recv)

    def kernel(*refs):
        it = iter(refs)
        adj = [next(it) for _ in range(n_rel)]     # (Nd, Ns)   bf16, one graph
        nsrc = [next(it) for _ in range(n_rel)]    # (Ns, 1)    f32  D_src^-1/2
        ndst = [next(it) for _ in range(n_rel)]    # (Nd, 1)    f32  D_dst^-1/2
        feat = [next(it) for _ in range(n_nt)]     # (N_t, Fin) bf16
        w1 = [next(it) for _ in range(n_recv)]     # (n_r*Fin, H) bf16, stacked over rels
        b1 = [next(it) for _ in range(n_recv)]     # (1, H)     f32, summed over rels
        w2 = [next(it) for _ in range(n_recv)]     # (n_r*H, H) bf16
        b2 = [next(it) for _ in range(n_recv)]     # (1, H)     f32
        wc_ref = next(it)                          # (H, C)     bf16
        bc_ref = next(it)                          # (1, C)     f32
        o_ref = next(it)                           # (1, C)     f32 logits for this graph

        def hetero_layer(x_by_nt, w_refs, b_refs, apply_relu):
            out = []
            for t in range(n_nt):
                rs = rels_to[t]
                if not rs:
                    # DGL HeteroGraphConv omits ntypes with no incoming relation; zeros
                    # keep shapes static here.  # TODO(synk): match DGL's omission.
                    out.append(jnp.zeros((n_nodes[ntypes[t]], hidden_dim), jnp.float32))
                    continue
                msgs = []
                for r in rs:
                    s = nt_index[rel_list[r][0]]
                    # fold D_src^-1/2 into the small (Ns, F) operand, not into A
                    xs = (x_by_nt[s] * nsrc[r][...]).astype(jnp.bfloat16)
                    m = jnp.dot(adj[r][...], xs,
                                preferred_element_type=jnp.float32) * ndst[r][...]
                    msgs.append(m)                 # (Nd_t, F) f32
                k = recv_pos[t]
                mc = (msgs[0] if len(msgs) == 1
                      else jnp.concatenate(msgs, axis=-1)).astype(jnp.bfloat16)
                # one fused GEMM per dst ntype: K = n_rel * F
                y = jnp.dot(mc, w_refs[k][...],
                            preferred_element_type=jnp.float32) + b_refs[k][...]
                out.append(jnp.maximum(y, 0.0) if apply_relu else y)
            return out

        x0 = [feat[t][...] for t in range(n_nt)]
        h1 = hetero_layer(x0, w1, b1, apply_relu=True)
        h2 = hetero_layer(h1, w2, b2, apply_relu=False)

        # readout: hg = sum_ntype( mean over this graph's nodes )  -> (1, H)
        hg = None
        for t in range(n_nt):
            m = jnp.sum(h2[t], axis=0, keepdims=True) * (1.0 / n_nodes[ntypes[t]])
            hg = m if hg is None else hg + m

        logits = jnp.dot(hg.astype(jnp.bfloat16), wc_ref[...],
                         preferred_element_type=jnp.float32) + bc_ref[...]
        o_ref[...] = logits

    return kernel, rels_to, recv


# ----------------------------------------------------------------------------
# Epilogue kernel: softmax over dim=0 (couples all graphs, so done after the grid)
# ----------------------------------------------------------------------------
def softmax_dim0_kernel(x_ref, o_ref):
    x = x_ref[...]
    mx = jnp.max(x, axis=0, keepdims=True)
    e = jnp.exp(x - mx)
    o_ref[...] = e * pl.reciprocal(jnp.sum(e, axis=0, keepdims=True))


# ----------------------------------------------------------------------------
# Wrapper: graph-only preprocessing (O(B*N)), then gridded pallas_call + epilogue
# ----------------------------------------------------------------------------
def hetero_classifier_forward(rel_list, ntypes, adjs, feats, params):
    rel_names = [r for (_, r, _) in rel_list]
    B = next(iter(feats.values())).shape[0]
    n_nodes = {nt: feats[nt].shape[1] for nt in ntypes}
    hidden_dim = params["wc"].shape[0]
    n_classes = params["wc"].shape[1]

    kernel, rels_to, recv = make_rgcn_kernel(rel_list, ntypes, n_nodes, hidden_dim)

    # degree norms depend only on the graph -> precompute once, pass as tiny vectors
    adj_bf16, nsrc, ndst = [], [], []
    for (_st, rel, _dt) in rel_list:
        a = adjs[rel]                                              # (B, Nd, Ns) f32 0/1
        out_deg = jnp.sum(a, axis=1)                               # (B, Ns) src out-degree
        in_deg = jnp.sum(a, axis=2)                                # (B, Nd) dst in-degree
        nsrc.append(jax.lax.rsqrt(jnp.maximum(out_deg, 1.0))[:, :, None])   # (B, Ns, 1)
        ndst.append(jax.lax.rsqrt(jnp.maximum(in_deg, 1.0))[:, :, None])    # (B, Nd, 1)
        adj_bf16.append(a.astype(jnp.bfloat16))                    # 0/1 exact in bf16

    feat_bf16 = [feats[nt].astype(jnp.bfloat16) for nt in ntypes]

    # fuse per-relation weights per destination ntype (stack along K, sum biases)
    def stack_params(wd, bd, t):
        rs = rels_to[t]
        w = jnp.concatenate([wd[rel_names[r]] for r in rs], axis=0).astype(jnp.bfloat16)
        b = bd[rel_names[rs[0]]].astype(jnp.float32)
        for r in rs[1:]:
            b = b + bd[rel_names[r]].astype(jnp.float32)
        return w, b

    w1s, b1s, w2s, b2s = [], [], [], []
    for t in recv:
        w, b = stack_params(params["w1"], params["b1"], t); w1s.append(w); b1s.append(b)
        w, b = stack_params(params["w2"], params["b2"], t); w2s.append(w); b2s.append(b)

    wc = params["wc"].astype(jnp.bfloat16)
    bc = params["bc"].astype(jnp.float32)

    args = adj_bf16 + nsrc + ndst + feat_bf16 + w1s + b1s + w2s + b2s + [wc, bc]

    # BlockSpecs: one graph per grid step (batch dim squeezed); params resident.
    def per_graph(a):
        return pl.BlockSpec((pl.Squeezed(),) + a.shape[1:], lambda b: (b, 0, 0))

    def shared(a):
        return pl.BlockSpec(a.shape, lambda b, nd=a.ndim: (0,) * nd)

    in_specs = ([per_graph(a) for a in adj_bf16]
                + [per_graph(a) for a in nsrc]
                + [per_graph(a) for a in ndst]
                + [per_graph(a) for a in feat_bf16]
                + [shared(a) for a in w1s] + [shared(a) for a in b1s]
                + [shared(a) for a in w2s] + [shared(a) for a in b2s]
                + [shared(wc), shared(bc)])

    logits3 = pl.pallas_call(
        kernel,
        out_shape=jax.ShapeDtypeStruct((B, 1, n_classes), jnp.float32),
        grid=(B,),
        in_specs=in_specs,
        out_specs=pl.BlockSpec((pl.Squeezed(), 1, n_classes), lambda b: (b, 0, 0)),
        compiler_params=pltpu.CompilerParams(dimension_semantics=("parallel",)),
    )(*args)
    logits = logits3.reshape(B, n_classes)

    # F.softmax(..., dim=0): normalize across the batch axis (tiny epilogue kernel).
    return pl.pallas_call(
        softmax_dim0_kernel,
        out_shape=jax.ShapeDtypeStruct((B, n_classes), jnp.float32),
        in_specs=[pl.BlockSpec(memory_space=pltpu.MemorySpace.VMEM)],
        out_specs=pl.BlockSpec(memory_space=pltpu.MemorySpace.VMEM),
    )(logits)


# ----------------------------------------------------------------------------
# Main
# ----------------------------------------------------------------------------
if __name__ == "__main__":
    B = 2                       # batch of graphs
    Nu, Ni = 8, 16              # nodes per graph: 'user', 'item'
    in_dim, hidden_dim, n_classes = 16, 32, 4

    ntypes = ["user", "item"]
    rel_list = [("user", "follows", "user"),
                ("user", "clicks", "item"),
                ("item", "clicked-by", "user")]
    rel_names = [r for (_, r, _) in rel_list]
    n_nodes = {"user": Nu, "item": Ni}

    key = jax.random.PRNGKey(0)
    keys = iter(jax.random.split(key, 64))

    # Graph: dense dst-major adjacency per relation, per graph in batch.
    adjs = {}
    for (st, rel, dt) in rel_list:
        adjs[rel] = jax.random.bernoulli(
            next(keys), 0.3, (B, n_nodes[dt], n_nodes[st])).astype(jnp.float32)

    # Node features per ntype.
    feats = {nt: jax.random.normal(next(keys), (B, n_nodes[nt], in_dim), jnp.float32) * 0.5
             for nt in ntypes}

    def init_w(k, shape):
        return (jax.random.normal(k, shape, jnp.float32) * 0.1).astype(jnp.float32)

    params = {
        "w1": {r: init_w(next(keys), (in_dim, hidden_dim)) for r in rel_names},
        "b1": {r: jnp.zeros((1, hidden_dim), jnp.float32) for r in rel_names},
        "w2": {r: init_w(next(keys), (hidden_dim, hidden_dim)) for r in rel_names},
        "b2": {r: jnp.zeros((1, hidden_dim), jnp.float32) for r in rel_names},
        "wc": init_w(next(keys), (hidden_dim, n_classes)),
        "bc": jnp.zeros((1, n_classes), jnp.float32),
    }

    out = hetero_classifier_forward(rel_list, ntypes, adjs, feats, params)
    out = jax.block_until_ready(out)

    assert out.shape == (B, n_classes)
    assert bool(jnp.all(jnp.isfinite(out)))
    # softmax over dim=0: columns sum to 1
    assert bool(jnp.allclose(jnp.sum(out, axis=0), jnp.ones((n_classes,)), atol=1e-5))
    print("KERNEL_OK")
</pallas_src>

<mosaic_0001>
module attributes {stable_mosaic.version = 11 : i64} {
  func.func @kernel(%arg0: i32, %arg1: memref<1x8x8xbf16, #tpu.memory_space<vmem>>, %arg2: memref<1x16x8xbf16, #tpu.memory_space<vmem>>, %arg3: memref<1x8x16xbf16, #tpu.memory_space<vmem>>, %arg4: memref<1x8x1xf32, #tpu.memory_space<vmem>>, %arg5: memref<1x8x1xf32, #tpu.memory_space<vmem>>, %arg6: memref<1x16x1xf32, #tpu.memory_space<vmem>>, %arg7: memref<1x8x1xf32, #tpu.memory_space<vmem>>, %arg8: memref<1x16x1xf32, #tpu.memory_space<vmem>>, %arg9: memref<1x8x1xf32, #tpu.memory_space<vmem>>, %arg10: memref<1x8x16xbf16, #tpu.memory_space<vmem>>, %arg11: memref<1x16x16xbf16, #tpu.memory_space<vmem>>, %arg12: memref<32x32xbf16, #tpu.memory_space<vmem>>, %arg13: memref<16x32xbf16, #tpu.memory_space<vmem>>, %arg14: memref<1x32xf32, #tpu.memory_space<vmem>>, %arg15: memref<1x32xf32, #tpu.memory_space<vmem>>, %arg16: memref<64x32xbf16, #tpu.memory_space<vmem>>, %arg17: memref<32x32xbf16, #tpu.memory_space<vmem>>, %arg18: memref<1x32xf32, #tpu.memory_space<vmem>>, %arg19: memref<1x32xf32, #tpu.memory_space<vmem>>, %arg20: memref<32x4xbf16, #tpu.memory_space<vmem>>, %arg21: memref<1x4xf32, #tpu.memory_space<vmem>>, %arg22: memref<1x1x4xf32, #tpu.memory_space<vmem>>) attributes {dimension_semantics = [#tpu.dimension_semantics<parallel>], iteration_bounds = array<i64: 2>, scalar_prefetch = 0 : i64, scratch_operands = 0 : i64, tpu.core_type = #tpu.core_type<tc>, window_params = [{transform_indices = @transform_0, window_bounds = array<i64: 1, 8, 8>}, {transform_indices = @transform_1, window_bounds = array<i64: 1, 16, 8>}, {transform_indices = @transform_2, window_bounds = array<i64: 1, 8, 16>}, {transform_indices = @transform_3, window_bounds = array<i64: 1, 8, 1>}, {transform_indices = @transform_4, window_bounds = array<i64: 1, 8, 1>}, {transform_indices = @transform_5, window_bounds = array<i64: 1, 16, 1>}, {transform_indices = @transform_6, window_bounds = array<i64: 1, 8, 1>}, {transform_indices = @transform_7, window_bounds = array<i64: 1, 16, 1>}, {transform_indices = @transform_8, window_bounds = array<i64: 1, 8, 1>}, {transform_indices = @transform_9, window_bounds = array<i64: 1, 8, 16>}, {transform_indices = @transform_10, window_bounds = array<i64: 1, 16, 16>}, {pipeline_mode = #tpu.pipeline_mode<synchronous>, transform_indices = @transform_11, window_bounds = array<i64: 32, 32>}, {pipeline_mode = #tpu.pipeline_mode<synchronous>, transform_indices = @transform_12, window_bounds = array<i64: 16, 32>}, {pipeline_mode = #tpu.pipeline_mode<synchronous>, transform_indices = @transform_13, window_bounds = array<i64: 1, 32>}, {pipeline_mode = #tpu.pipeline_mode<synchronous>, transform_indices = @transform_14, window_bounds = array<i64: 1, 32>}, {pipeline_mode = #tpu.pipeline_mode<synchronous>, transform_indices = @transform_15, window_bounds = array<i64: 64, 32>}, {pipeline_mode = #tpu.pipeline_mode<synchronous>, transform_indices = @transform_16, window_bounds = array<i64: 32, 32>}, {pipeline_mode = #tpu.pipeline_mode<synchronous>, transform_indices = @transform_17, window_bounds = array<i64: 1, 32>}, {pipeline_mode = #tpu.pipeline_mode<synchronous>, transform_indices = @transform_18, window_bounds = array<i64: 1, 32>}, {pipeline_mode = #tpu.pipeline_mode<synchronous>, transform_indices = @transform_19, window_bounds = array<i64: 32, 4>}, {pipeline_mode = #tpu.pipeline_mode<synchronous>, transform_indices = @transform_20, window_bounds = array<i64: 1, 4>}, {transform_indices = @transform_21, window_bounds = array<i64: 1, 1, 4>}]} {
    %c0 = arith.constant 0 : index
    %c0_0 = arith.constant 0 : index
    %c0_1 = arith.constant 0 : index
    %0 = vector.load %arg10[%c0, %c0_0, %c0_1] : memref<1x8x16xbf16, #tpu.memory_space<vmem>>, vector<1x8x16xbf16>
    %1 = vector.shape_cast %0 : vector<1x8x16xbf16> to vector<8x16xbf16>
    %c0_2 = arith.constant 0 : index
    %c0_3 = arith.constant 0 : index
    %c0_4 = arith.constant 0 : index
    %2 = vector.load %arg11[%c0_2, %c0_3, %c0_4] : memref<1x16x16xbf16, #tpu.memory_space<vmem>>, vector<1x16x16xbf16>
    %3 = vector.shape_cast %2 : vector<1x16x16xbf16> to vector<16x16xbf16>
    %c0_5 = arith.constant 0 : index
    %c0_6 = arith.constant 0 : index
    %c0_7 = arith.constant 0 : index
    %4 = vector.load %arg4[%c0_5, %c0_6, %c0_7] : memref<1x8x1xf32, #tpu.memory_space<vmem>>, vector<1x8x1xf32>
    %5 = vector.shape_cast %4 : vector<1x8x1xf32> to vector<8x1xf32>
    %6 = arith.extf %1 : vector<8x16xbf16> to vector<8x16xf32>
    %7 = vector.broadcast %5 : vector<8x1xf32> to vector<8x16xf32>
    %8 = arith.mulf %6, %7 : vector<8x16xf32>
    %9 = arith.truncf %8 : vector<8x16xf32> to vector<8x16xbf16>
    %c0_8 = arith.constant 0 : index
    %c0_9 = arith.constant 0 : index
    %c0_10 = arith.constant 0 : index
    %10 = vector.load %arg1[%c0_8, %c0_9, %c0_10] : memref<1x8x8xbf16, #tpu.memory_space<vmem>>, vector<1x8x8xbf16>
    %11 = vector.shape_cast %10 : vector<1x8x8xbf16> to vector<8x8xbf16>
    %cst = arith.constant dense<0.000000e+00> : vector<8x16xf32>
    %12 = tpu.matmul %11, %9, %cst {dimension_numbers = #tpu.dot_dimension_numbers<[1], [0], [0], [1], [0, 0, 1, 1], [], []>} : vector<8x8xbf16>, vector<8x16xbf16>, vector<8x16xf32> -> vector<8x16xf32>
    %c0_11 = arith.constant 0 : index
    %c0_12 = arith.constant 0 : index
    %c0_13 = arith.constant 0 : index
    %13 = vector.load %arg7[%c0_11, %c0_12, %c0_13] : memref<1x8x1xf32, #tpu.memory_space<vmem>>, vector<1x8x1xf32>
    %14 = vector.shape_cast %13 : vector<1x8x1xf32> to vector<8x1xf32>
    %15 = vector.broadcast %14 : vector<8x1xf32> to vector<8x16xf32>
    %16 = arith.mulf %12, %15 : vector<8x16xf32>
    %c0_14 = arith.constant 0 : index
    %c0_15 = arith.constant 0 : index
    %c0_16 = arith.constant 0 : index
    %17 = vector.load %arg6[%c0_14, %c0_15, %c0_16] : memref<1x16x1xf32, #tpu.memory_space<vmem>>, vector<1x16x1xf32>
    %18 = vector.shape_cast %17 : vector<1x16x1xf32> to vector<16x1xf32>
    %19 = arith.extf %3 : vector<16x16xbf16> to vector<16x16xf32>
    %20 = vector.broadcast %18 : vector<16x1xf32> to vector<16x16xf32>
    %21 = arith.mulf %19, %20 : vector<16x16xf32>
    %22 = arith.truncf %21 : vector<16x16xf32> to vector<16x16xbf16>
    %c0_17 = arith.constant 0 : index
    %c0_18 = arith.constant 0 : index
    %c0_19 = arith.constant 0 : index
    %23 = vector.load %arg3[%c0_17, %c0_18, %c0_19] : memref<1x8x16xbf16, #tpu.memory_space<vmem>>, vector<1x8x16xbf16>
    %24 = vector.shape_cast %23 : vector<1x8x16xbf16> to vector<8x16xbf16>
    %cst_20 = arith.constant dense<0.000000e+00> : vector<8x16xf32>
    %25 = tpu.matmul %24, %22, %cst_20 {dimension_numbers = #tpu.dot_dimension_numbers<[1], [0], [0], [1], [0, 0, 1, 1], [], []>} : vector<8x16xbf16>, vector<16x16xbf16>, vector<8x16xf32> -> vector<8x16xf32>
    %c0_21 = arith.constant 0 : index
    %c0_22 = arith.constant 0 : index
    %c0_23 = arith.constant 0 : index
    %26 = vector.load %arg9[%c0_21, %c0_22, %c0_23] : memref<1x8x1xf32, #tpu.memory_space<vmem>>, vector<1x8x1xf32>
    %27 = vector.shape_cast %26 : vector<1x8x1xf32> to vector<8x1xf32>
    %28 = vector.broadcast %27 : vector<8x1xf32> to vector<8x16xf32>
    %29 = arith.mulf %25, %28 : vector<8x16xf32>
    %30 = tpu.concatenate %16, %29 in 1 : vector<8x16xf32>, vector<8x16xf32> -> vector<8x32xf32>
    %31 = arith.truncf %30 : vector<8x32xf32> to vector<8x32xbf16>
    %c0_24 = arith.constant 0 : index
    %c0_25 = arith.constant 0 : index
    %32 = vector.load %arg12[%c0_24, %c0_25] : memref<32x32xbf16, #tpu.memory_space<vmem>>, vector<32x32xbf16>
    %cst_26 = arith.constant dense<0.000000e+00> : vector<8x32xf32>
    %33 = tpu.matmul %31, %32, %cst_26 {dimension_numbers = #tpu.dot_dimension_numbers<[1], [0], [0], [1], [0, 0, 1, 1], [], []>} : vector<8x32xbf16>, vector<32x32xbf16>, vector<8x32xf32> -> vector<8x32xf32>
    %c0_27 = arith.constant 0 : index
    %c0_28 = arith.constant 0 : index
    %34 = vector.load %arg14[%c0_27, %c0_28] : memref<1x32xf32, #tpu.memory_space<vmem>>, vector<1x32xf32>
    %35 = vector.broadcast %34 : vector<1x32xf32> to vector<8x32xf32>
    %36 = arith.addf %33, %35 : vector<8x32xf32>
    %cst_29 = arith.constant 0.000000e+00 : f32
    %37 = vector.broadcast %cst_29 : f32 to vector<8x32xf32>
    %38 = arith.maximumf %36, %37 : vector<8x32xf32>
    %c0_30 = arith.constant 0 : index
    %c0_31 = arith.constant 0 : index
    %c0_32 = arith.constant 0 : index
    %39 = vector.load %arg5[%c0_30, %c0_31, %c0_32] : memref<1x8x1xf32, #tpu.memory_space<vmem>>, vector<1x8x1xf32>
    %40 = vector.shape_cast %39 : vector<1x8x1xf32> to vector<8x1xf32>
    %41 = arith.extf %1 : vector<8x16xbf16> to vector<8x16xf32>
    %42 = vector.broadcast %40 : vector<8x1xf32> to vector<8x16xf32>
    %43 = arith.mulf %41, %42 : vector<8x16xf32>
    %44 = arith.truncf %43 : vector<8x16xf32> to vector<8x16xbf16>
    %c0_33 = arith.constant 0 : index
    %c0_34 = arith.constant 0 : index
    %c0_35 = arith.constant 0 : index
    %45 = vector.load %arg2[%c0_33, %c0_34, %c0_35] : memref<1x16x8xbf16, #tpu.memory_space<vmem>>, vector<1x16x8xbf16>
    %46 = vector.shape_cast %45 : vector<1x16x8xbf16> to vector<16x8xbf16>
    %cst_36 = arith.constant dense<0.000000e+00> : vector<16x16xf32>
    %47 = tpu.matmul %46, %44, %cst_36 {dimension_numbers = #tpu.dot_dimension_numbers<[1], [0], [0], [1], [0, 0, 1, 1], [], []>} : vector<16x8xbf16>, vector<8x16xbf16>, vector<16x16xf32> -> vector<16x16xf32>
    %c0_37 = arith.constant 0 : index
    %c0_38 = arith.constant 0 : index
    %c0_39 = arith.constant 0 : index
    %48 = vector.load %arg8[%c0_37, %c0_38, %c0_39] : memref<1x16x1xf32, #tpu.memory_space<vmem>>, vector<1x16x1xf32>
    %49 = vector.shape_cast %48 : vector<1x16x1xf32> to vector<16x1xf32>
    %50 = vector.broadcast %49 : vector<16x1xf32> to vector<16x16xf32>
    %51 = arith.mulf %47, %50 : vector<16x16xf32>
    %52 = arith.truncf %51 : vector<16x16xf32> to vector<16x16xbf16>
    %c0_40 = arith.constant 0 : index
    %c0_41 = arith.constant 0 : index
    %53 = vector.load %arg13[%c0_40, %c0_41] : memref<16x32xbf16, #tpu.memory_space<vmem>>, vector<16x32xbf16>
    %cst_42 = arith.constant dense<0.000000e+00> : vector<16x32xf32>
    %54 = tpu.matmul %52, %53, %cst_42 {dimension_numbers = #tpu.dot_dimension_numbers<[1], [0], [0], [1], [0, 0, 1, 1], [], []>} : vector<16x16xbf16>, vector<16x32xbf16>, vector<16x32xf32> -> vector<16x32xf32>
    %c0_43 = arith.constant 0 : index
    %c0_44 = arith.constant 0 : index
    %55 = vector.load %arg15[%c0_43, %c0_44] : memref<1x32xf32, #tpu.memory_space<vmem>>, vector<1x32xf32>
    %56 = vector.broadcast %55 : vector<1x32xf32> to vector<16x32xf32>
    %57 = arith.addf %54, %56 : vector<16x32xf32>
    %cst_45 = arith.constant 0.000000e+00 : f32
    %58 = vector.broadcast %cst_45 : f32 to vector<16x32xf32>
    %59 = arith.maximumf %57, %58 : vector<16x32xf32>
    %c0_46 = arith.constant 0 : index
    %c0_47 = arith.constant 0 : index
    %c0_48 = arith.constant 0 : index
    %60 = vector.load %arg4[%c0_46, %c0_47, %c0_48] : memref<1x8x1xf32, #tpu.memory_space<vmem>>, vector<1x8x1xf32>
    %61 = vector.shape_cast %60 : vector<1x8x1xf32> to vector<8x1xf32>
    %62 = vector.broadcast %61 : vector<8x1xf32> to vector<8x32xf32>
    %63 = arith.mulf %38, %62 : vector<8x32xf32>
    %64 = arith.truncf %63 : vector<8x32xf32> to vector<8x32xbf16>
    %c0_49 = arith.constant 0 : index
    %c0_50 = arith.constant 0 : index
    %c0_51 = arith.constant 0 : index
    %65 = vector.load %arg1[%c0_49, %c0_50, %c0_51] : memref<1x8x8xbf16, #tpu.memory_space<vmem>>, vector<1x8x8xbf16>
    %66 = vector.shape_cast %65 : vector<1x8x8xbf16> to vector<8x8xbf16>
    %cst_52 = arith.constant dense<0.000000e+00> : vector<8x32xf32>
    %67 = tpu.matmul %66, %64, %cst_52 {dimension_numbers = #tpu.dot_dimension_numbers<[1], [0], [0], [1], [0, 0, 1, 1], [], []>} : vector<8x8xbf16>, vector<8x32xbf16>, vector<8x32xf32> -> vector<8x32xf32>
    %c0_53 = arith.constant 0 : index
    %c0_54 = arith.constant 0 : index
    %c0_55 = arith.constant 0 : index
    %68 = vector.load %arg7[%c0_53, %c0_54, %c0_55] : memref<1x8x1xf32, #tpu.memory_space<vmem>>, vector<1x8x1xf32>
    %69 = vector.shape_cast %68 : vector<1x8x1xf32> to vector<8x1xf32>
    %70 = vector.broadcast %69 : vector<8x1xf32> to vector<8x32xf32>
    %71 = arith.mulf %67, %70 : vector<8x32xf32>
    %c0_56 = arith.constant 0 : index
    %c0_57 = arith.constant 0 : index
    %c0_58 = arith.constant 0 : index
    %72 = vector.load %arg6[%c0_56, %c0_57, %c0_58] : memref<1x16x1xf32, #tpu.memory_space<vmem>>, vector<1x16x1xf32>
    %73 = vector.shape_cast %72 : vector<1x16x1xf32> to vector<16x1xf32>
    %74 = vector.broadcast %73 : vector<16x1xf32> to vector<16x32xf32>
    %75 = arith.mulf %59, %74 : vector<16x32xf32>
    %76 = arith.truncf %75 : vector<16x32xf32> to vector<16x32xbf16>
    %c0_59 = arith.constant 0 : index
    %c0_60 = arith.constant 0 : index
    %c0_61 = arith.constant 0 : index
    %77 = vector.load %arg3[%c0_59, %c0_60, %c0_61] : memref<1x8x16xbf16, #tpu.memory_space<vmem>>, vector<1x8x16xbf16>
    %78 = vector.shape_cast %77 : vector<1x8x16xbf16> to vector<8x16xbf16>
    %cst_62 = arith.constant dense<0.000000e+00> : vector<8x32xf32>
    %79 = tpu.matmul %78, %76, %cst_62 {dimension_numbers = #tpu.dot_dimension_numbers<[1], [0], [0], [1], [0, 0, 1, 1], [], []>} : vector<8x16xbf16>, vector<16x32xbf16>, vector<8x32xf32> -> vector<8x32xf32>
    %c0_63 = arith.constant 0 : index
    %c0_64 = arith.constant 0 : index
    %c0_65 = arith.constant 0 : index
    %80 = vector.load %arg9[%c0_63, %c0_64, %c0_65] : memref<1x8x1xf32, #tpu.memory_space<vmem>>, vector<1x8x1xf32>
    %81 = vector.shape_cast %80 : vector<1x8x1xf32> to vector<8x1xf32>
    %82 = vector.broadcast %81 : vector<8x1xf32> to vector<8x32xf32>
    %83 = arith.mulf %79, %82 : vector<8x32xf32>
    %84 = tpu.concatenate %71, %83 in 1 : vector<8x32xf32>, vector<8x32xf32> -> vector<8x64xf32>
    %85 = arith.truncf %84 : vector<8x64xf32> to vector<8x64xbf16>
    %c0_66 = arith.constant 0 : index
    %c0_67 = arith.constant 0 : index
    %86 = vector.load %arg16[%c0_66, %c0_67] : memref<64x32xbf16, #tpu.memory_space<vmem>>, vector<64x32xbf16>
    %cst_68 = arith.constant dense<0.000000e+00> : vector<8x32xf32>
    %87 = tpu.matmul %85, %86, %cst_68 {dimension_numbers = #tpu.dot_dimension_numbers<[1], [0], [0], [1], [0, 0, 1, 1], [], []>} : vector<8x64xbf16>, vector<64x32xbf16>, vector<8x32xf32> -> vector<8x32xf32>
    %c0_69 = arith.constant 0 : index
    %c0_70 = arith.constant 0 : index
    %88 = vector.load %arg18[%c0_69, %c0_70] : memref<1x32xf32, #tpu.memory_space<vmem>>, vector<1x32xf32>
    %89 = vector.broadcast %88 : vector<1x32xf32> to vector<8x32xf32>
    %90 = arith.addf %87, %89 : vector<8x32xf32>
    %c0_71 = arith.constant 0 : index
    %c0_72 = arith.constant 0 : index
    %c0_73 = arith.constant 0 : index
    %91 = vector.load %arg5[%c0_71, %c0_72, %c0_73] : memref<1x8x1xf32, #tpu.memory_space<vmem>>, vector<1x8x1xf32>
    %92 = vector.shape_cast %91 : vector<1x8x1xf32> to vector<8x1xf32>
    %93 = vector.broadcast %92 : vector<8x1xf32> to vector<8x32xf32>
    %94 = arith.mulf %38, %93 : vector<8x32xf32>
    %95 = arith.truncf %94 : vector<8x32xf32> to vector<8x32xbf16>
    %c0_74 = arith.constant 0 : index
    %c0_75 = arith.constant 0 : index
    %c0_76 = arith.constant 0 : index
    %96 = vector.load %arg2[%c0_74, %c0_75, %c0_76] : memref<1x16x8xbf16, #tpu.memory_space<vmem>>, vector<1x16x8xbf16>
    %97 = vector.shape_cast %96 : vector<1x16x8xbf16> to vector<16x8xbf16>
    %cst_77 = arith.constant dense<0.000000e+00> : vector<16x32xf32>
    %98 = tpu.matmul %97, %95, %cst_77 {dimension_numbers = #tpu.dot_dimension_numbers<[1], [0], [0], [1], [0, 0, 1, 1], [], []>} : vector<16x8xbf16>, vector<8x32xbf16>, vector<16x32xf32> -> vector<16x32xf32>
    %c0_78 = arith.constant 0 : index
    %c0_79 = arith.constant 0 : index
    %c0_80 = arith.constant 0 : index
    %99 = vector.load %arg8[%c0_78, %c0_79, %c0_80] : memref<1x16x1xf32, #tpu.memory_space<vmem>>, vector<1x16x1xf32>
    %100 = vector.shape_cast %99 : vector<1x16x1xf32> to vector<16x1xf32>
    %101 = vector.broadcast %100 : vector<16x1xf32> to vector<16x32xf32>
    %102 = arith.mulf %98, %101 : vector<16x32xf32>
    %103 = arith.truncf %102 : vector<16x32xf32> to vector<16x32xbf16>
    %c0_81 = arith.constant 0 : index
    %c0_82 = arith.constant 0 : index
    %104 = vector.load %arg17[%c0_81, %c0_82] : memref<32x32xbf16, #tpu.memory_space<vmem>>, vector<32x32xbf16>
    %cst_83 = arith.constant dense<0.000000e+00> : vector<16x32xf32>
    %105 = tpu.matmul %103, %104, %cst_83 {dimension_numbers = #tpu.dot_dimension_numbers<[1], [0], [0], [1], [0, 0, 1, 1], [], []>} : vector<16x32xbf16>, vector<32x32xbf16>, vector<16x32xf32> -> vector<16x32xf32>
    %c0_84 = arith.constant 0 : index
    %c0_85 = arith.constant 0 : index
    %106 = vector.load %arg19[%c0_84, %c0_85] : memref<1x32xf32, #tpu.memory_space<vmem>>, vector<1x32xf32>
    %107 = vector.broadcast %106 : vector<1x32xf32> to vector<16x32xf32>
    %108 = arith.addf %105, %107 : vector<16x32xf32>
    %cst_86 = arith.constant dense<0.000000e+00> : vector<32xf32>
    %109 = vector.multi_reduction <add>, %90, %cst_86 [0] : vector<8x32xf32> to vector<32xf32>
    %110 = vector.shape_cast %109 : vector<32xf32> to vector<1x32xf32>
    %cst_87 = arith.constant 1.250000e-01 : f32
    %111 = vector.broadcast %cst_87 : f32 to vector<1x32xf32>
    %112 = arith.mulf %110, %111 : vector<1x32xf32>
    %cst_88 = arith.constant dense<0.000000e+00> : vector<32xf32>
    %113 = vector.multi_reduction <add>, %108, %cst_88 [0] : vector<16x32xf32> to vector<32xf32>
    %114 = vector.shape_cast %113 : vector<32xf32> to vector<1x32xf32>
    %cst_89 = arith.constant 6.250000e-02 : f32
    %115 = vector.broadcast %cst_89 : f32 to vector<1x32xf32>
    %116 = arith.mulf %114, %115 : vector<1x32xf32>
    %117 = arith.addf %112, %116 : vector<1x32xf32>
    %118 = arith.truncf %117 : vector<1x32xf32> to vector<1x32xbf16>
    %c0_90 = arith.constant 0 : index
    %c0_91 = arith.constant 0 : index
    %119 = vector.load %arg20[%c0_90, %c0_91] : memref<32x4xbf16, #tpu.memory_space<vmem>>, vector<32x4xbf16>
    %cst_92 = arith.constant dense<0.000000e+00> : vector<1x4xf32>
    %120 = tpu.matmul %118, %119, %cst_92 {dimension_numbers = #tpu.dot_dimension_numbers<[1], [0], [0], [1], [0, 0, 1, 1], [], []>} : vector<1x32xbf16>, vector<32x4xbf16>, vector<1x4xf32> -> vector<1x4xf32>
    %c0_93 = arith.constant 0 : index
    %c0_94 = arith.constant 0 : index
    %121 = vector.load %arg21[%c0_93, %c0_94] : memref<1x4xf32, #tpu.memory_space<vmem>>, vector<1x4xf32>
    %122 = arith.addf %120, %121 : vector<1x4xf32>
    %c0_95 = arith.constant 0 : index
    %c0_96 = arith.constant 0 : index
    %c0_97 = arith.constant 0 : index
    %123 = vector.load %arg22[%c0_95, %c0_96, %c0_97] : memref<1x1x4xf32, #tpu.memory_space<vmem>>, vector<1x1x4xf32>
    %124 = vector.shape_cast %123 : vector<1x1x4xf32> to vector<1x4xf32>
    %125 = vector.shape_cast %122 : vector<1x4xf32> to vector<1x1x4xf32>
    tpu.vector_store %arg22[%c0_95, %c0_96, %c0_97], %125 {strides = array<i32>} : memref<1x1x4xf32, #tpu.memory_space<vmem>>, vector<1x1x4xf32>,
    return
  }
  func.func @transform_0(%arg0: i32) -> (i32, i32, i32) {
    %c0_i32 = arith.constant 0 : i32
    %c0_i32_0 = arith.constant 0 : i32
    %c0_i32_1 = arith.constant 0 : i32
    return %arg0, %c0_i32, %c0_i32_0 : i32, i32, i32
  }
  func.func @transform_1(%arg0: i32) -> (i32, i32, i32) {
    %c0_i32 = arith.constant 0 : i32
    %c0_i32_0 = arith.constant 0 : i32
    %c0_i32_1 = arith.constant 0 : i32
    return %arg0, %c0_i32, %c0_i32_0 : i32, i32, i32
  }
  func.func @transform_2(%arg0: i32) -> (i32, i32, i32) {
    %c0_i32 = arith.constant 0 : i32
    %c0_i32_0 = arith.constant 0 : i32
    %c0_i32_1 = arith.constant 0 : i32
    return %arg0, %c0_i32, %c0_i32_0 : i32, i32, i32
  }
  func.func @transform_3(%arg0: i32) -> (i32, i32, i32) {
    %c0_i32 = arith.constant 0 : i32
    %c0_i32_0 = arith.constant 0 : i32
    %c0_i32_1 = arith.constant 0 : i32
    return %arg0, %c0_i32, %c0_i32_0 : i32, i32, i32
  }
  func.func @transform_4(%arg0: i32) -> (i32, i32, i32) {
    %c0_i32 = arith.constant 0 : i32
    %c0_i32_0 = arith.constant 0 : i32
    %c0_i32_1 = arith.constant 0 : i32
    return %arg0, %c0_i32, %c0_i32_0 : i32, i32, i32
  }
  func.func @transform_5(%arg0: i32) -> (i32, i32, i32) {
    %c0_i32 = arith.constant 0 : i32
    %c0_i32_0 = arith.constant 0 : i32
    %c0_i32_1 = arith.constant 0 : i32
    return %arg0, %c0_i32, %c0_i32_0 : i32, i32, i32
  }
  func.func @transform_6(%arg0: i32) -> (i32, i32, i32) {
    %c0_i32 = arith.constant 0 : i32
    %c0_i32_0 = arith.constant 0 : i32
    %c0_i32_1 = arith.constant 0 : i32
    return %arg0, %c0_i32, %c0_i32_0 : i32, i32, i32
  }
  func.func @transform_7(%arg0: i32) -> (i32, i32, i32) {
    %c0_i32 = arith.constant 0 : i32
    %c0_i32_0 = arith.constant 0 : i32
    %c0_i32_1 = arith.constant 0 : i32
    return %arg0, %c0_i32, %c0_i32_0 : i32, i32, i32
  }
  func.func @transform_8(%arg0: i32) -> (i32, i32, i32) {
    %c0_i32 = arith.constant 0 : i32
    %c0_i32_0 = arith.constant 0 : i32
    %c0_i32_1 = arith.constant 0 : i32
    return %arg0, %c0_i32, %c0_i32_0 : i32, i32, i32
  }
  func.func @transform_9(%arg0: i32) -> (i32, i32, i32) {
    %c0_i32 = arith.constant 0 : i32
    %c0_i32_0 = arith.constant 0 : i32
    %c0_i32_1 = arith.constant 0 : i32
    return %arg0, %c0_i32, %c0_i32_0 : i32, i32, i32
  }
  func.func @transform_10(%arg0: i32) -> (i32, i32, i32) {
    %c0_i32 = arith.constant 0 : i32
    %c0_i32_0 = arith.constant 0 : i32
    %c0_i32_1 = arith.constant 0 : i32
    return %arg0, %c0_i32, %c0_i32_0 : i32, i32, i32
  }
  func.func @transform_11(%arg0: i32) -> (i32, i32) {
    %c0_i32 = arith.constant 0 : i32
    %c0_i32_0 = arith.constant 0 : i32
    %c0_i32_1 = arith.constant 0 : i32
    return %c0_i32, %c0_i32_0 : i32, i32
  }
  func.func @transform_12(%arg0: i32) -> (i32, i32) {
    %c0_i32 = arith.constant 0 : i32
    %c0_i32_0 = arith.constant 0 : i32
    %c0_i32_1 = arith.constant 0 : i32
    return %c0_i32, %c0_i32_0 : i32, i32
  }
  func.func @transform_13(%arg0: i32) -> (i32, i32) {
    %c0_i32 = arith.constant 0 : i32
    %c0_i32_0 = arith.constant 0 : i32
    %c0_i32_1 = arith.constant 0 : i32
    return %c0_i32, %c0_i32_0 : i32, i32
  }
  func.func @transform_14(%arg0: i32) -> (i32, i32) {
    %c0_i32 = arith.constant 0 : i32
    %c0_i32_0 = arith.constant 0 : i32
    %c0_i32_1 = arith.constant 0 : i32
    return %c0_i32, %c0_i32_0 : i32, i32
  }
  func.func @transform_15(%arg0: i32) -> (i32, i32) {
    %c0_i32 = arith.constant 0 : i32
    %c0_i32_0 = arith.constant 0 : i32
    %c0_i32_1 = arith.constant 0 : i32
    return %c0_i32, %c0_i32_0 : i32, i32
  }
  func.func @transform_16(%arg0: i32) -> (i32, i32) {
    %c0_i32 = arith.constant 0 : i32
    %c0_i32_0 = arith.constant 0 : i32
    %c0_i32_1 = arith.constant 0 : i32
    return %c0_i32, %c0_i32_0 : i32, i32
  }
  func.func @transform_17(%arg0: i32) -> (i32, i32) {
    %c0_i32 = arith.constant 0 : i32
    %c0_i32_0 = arith.constant 0 : i32
    %c0_i32_1 = arith.constant 0 : i32
    return %c0_i32, %c0_i32_0 : i32, i32
  }
  func.func @transform_18(%arg0: i32) -> (i32, i32) {
    %c0_i32 = arith.constant 0 : i32
    %c0_i32_0 = arith.constant 0 : i32
    %c0_i32_1 = arith.constant 0 : i32
    return %c0_i32, %c0_i32_0 : i32, i32
  }
  func.func @transform_19(%arg0: i32) -> (i32, i32) {
    %c0_i32 = arith.constant 0 : i32
    %c0_i32_0 = arith.constant 0 : i32
    %c0_i32_1 = arith.constant 0 : i32
    return %c0_i32, %c0_i32_0 : i32, i32
  }
  func.func @transform_20(%arg0: i32) -> (i32, i32) {
    %c0_i32 = arith.constant 0 : i32
    %c0_i32_0 = arith.constant 0 : i32
    %c0_i32_1 = arith.constant 0 : i32
    return %c0_i32, %c0_i32_0 : i32, i32
  }
  func.func @transform_21(%arg0: i32) -> (i32, i32, i32) {
    %c0_i32 = arith.constant 0 : i32
    %c0_i32_0 = arith.constant 0 : i32
    %c0_i32_1 = arith.constant 0 : i32
    return %arg0, %c0_i32, %c0_i32_0 : i32, i32, i32
  }
}

</mosaic_0001>

<bundles_post_ra>
// kernel: tpu_custom_call.1
= control target key start
LH: loop header
LB: loop body
LE: loop exit
PB: predicated region body
PF: predicated region fallthrough
CT: control target
= control target key end

     0   :  { %s2456_s0 = inlined_call_operand.vmem [shape: bf16[2,8,8], index: 0, kind: input, shape index: {}]   ;;  %s2457_s1 = inlined_call_operand.vmem [shape: bf16[2,16,8], index: 1, kind: input, shape index: {}]   ;;  %s2458_s2 = inlined_call_operand.vmem [shape: bf16[2,8,16], index: 2, kind: input, shape index: {}]   ;;  %s2459_s3 = inlined_call_operand.vmem [shape: f32[2,8,1], index: 3, kind: input, shape index: {}]   ;;  %s2460_s4 = inlined_call_operand.vmem [shape: f32[2,8,1], index: 4, kind: input, shape index: {}]   ;;  %s2461_s5 = inlined_call_operand.vmem [shape: f32[2,16,1], index: 5, kind: input, shape index: {}]   ;;  %s2462_s6 = inlined_call_operand.vmem [shape: f32[2,8,1], index: 6, kind: input, shape index: {}]   ;;  %s2463_s7 = inlined_call_operand.vmem [shape: f32[2,16,1], index: 7, kind: input, shape index: {}]   ;;  %s2464_s8 = inlined_call_operand.vmem [shape: f32[2,8,1], index: 8, kind: input, shape index: {}]   ;;  %s2465_s9 = inlined_call_operand.vmem [shape: bf16[2,8,16], index: 9, kind: input, shape index: {}]   ;;  %s2466_s10 = inlined_call_operand.vmem [shape: bf16[2,16,16], index: 10, kind: input, shape index: {}]   ;;  %s2467_s11 = inlined_call_operand.vmem [shape: bf16[32,32], index: 11, kind: input, shape index: {}]   ;;  %s2468_s12 = inlined_call_operand.vmem [shape: bf16[16,32], index: 12, kind: input, shape index: {}]   ;;  %s2469_s13 = inlined_call_operand.vmem [shape: f32[1,32], index: 13, kind: input, shape index: {}]   ;;  %s2470_s14 = inlined_call_operand.vmem [shape: f32[1,32], index: 14, kind: input, shape index: {}]   ;;  %s2471_s15 = inlined_call_operand.vmem [shape: bf16[64,32], index: 15, kind: input, shape index: {}]   ;;  %s2472_s16 = inlined_call_operand.vmem [shape: bf16[32,32], index: 16, kind: input, shape index: {}]   ;;  %s2473_s17 = inlined_call_operand.vmem [shape: f32[1,32], index: 17, kind: input, shape index: {}]   ;;  %s2474_s18 = inlined_call_operand.vmem [shape: f32[1,32], index: 18, kind: input, shape index: {}]   ;;  %s2475_s19 = inlined_call_operand.vmem [shape: bf16[32,4], index: 19, kind: input, shape index: {}]   ;;  %s2476_s20 = inlined_call_operand.vmem [shape: f32[1,4], index: 20, kind: input, shape index: {}]   ;;  %s2477_s21 = inlined_call_operand.hbm [shape: f32[2,1,4], index: 21, kind: output, shape index: {}]  }
   0x1   :  { %2490 = sst [smem:[#allocation14_spill]] %s2456_s0 }
   0x2   :  { %2491 = sst [smem:[#allocation15_spill]] %s2457_s1 }
   0x3   :  { %2492 = sst [smem:[#allocation16_spill]] %s2458_s2 }
   0x4   :  { %2493 = sst [smem:[#allocation17_spill]] %s2459_s3 }
   0x5   :  { %2494 = sst [smem:[#allocation18_spill]] %s2460_s4 }
   0x6   :  { %2495 = sst [smem:[#allocation19_spill]] %s2461_s5 }
   0x7   :  { %2496 = sst [smem:[#allocation20_spill]] %s2473_s17 }
   0x8   :  { %2497 = sst [smem:[#allocation21_spill]] %s2476_s20 }
   0x9   :  { %2498 = sst [smem:[#allocation22_spill]] %s2477_s21 }
   0xa   :  { %26 = vsyncpa [#allocation3], 0 }
   0xb   :  { %28 = vsyncpa [#allocation3 + $0x1], 0  ;;  %s2149_s2 = smov 0   ;;  %s2151_s25 = smov 0  }
   0xc   :  { %s2153_s26 = smov 0   ;;  %s2155_s27 = smov 0  }
   0xd LB: > { %2499 = sst [smem:[#allocation5_spill]] %s2019_s2  ;;  %s2170_s3 = sadd.s32 4294967295, %s2031_s27   ;;  %s2031_s27 = sphi %s2155_s27, %s2526_s27   ;;  %s2027_s26 = sphi %s2153_s26, %s2529_s26   ;;  %s2023_s25 = sphi %s2151_s25, %s2528_s25   ;;  %s2019_s2 = sphi %s2149_s2, %s2527_s2  }
   0xe   : > { %2500 = sst [smem:[#allocation6_spill]] %s2023_s25  ;;  %s1748_s28 = sadd.s32 4294967294, %s2031_s27  }
   0xf   : > { %2501 = sst [smem:[#allocation7_spill]] %s2027_s26  ;;  %s2174_s29 = sadd.s32 1, %s2031_s27  }
  0x10   : > { %2502 = sst [smem:[#allocation8_spill]] %s2031_s27  ;;  %s537_s0 = sadd.s32 1, %s2027_s26 }
  0x11   : > { %2503 = sst [smem:[#allocation9_spill]] %s2170_s3  ;;  %s534_s4 = ssub.s32 %s2031_s27, %s2174_s29 }
  0x12   : > { %2504 = sst [smem:[#allocation10_spill]] %s2174_s29  ;;  %p547_p0 = scmp.ne.s32.totalorder %s2027_s26, %s2023_s25 }
  0x13   : > { %p535_p1 = scmp.eq.s32.totalorder %s534_s4, 0  ;;  %p548_p2 = scmp.eq.s32.totalorder %s2170_s3, 1 }
  0x14   : > { %p553_p3 = scmp.ne.s32.totalorder %s2023_s25, %s2019_s2  ;;  %p554_p4 = scmp.eq.s32.totalorder %s1748_s28, 1 }
  0x15   : > { %s2185_s30 = scalar_select %p535_p1, %s2027_s26, %s537_s0  }
  0x16   : > { %p2187_p5 = por %p548_p2, %p547_p0  ;;  %p2191_p6 = por %p554_p4, %p553_p3 }
  0x17   : > { %2505 = sst [smem:[#allocation11_spill]] %s2185_s30  ;;  %p1751_p7 = scmp.ge.s32.totalorder %s2031_s27, 1 }
  0x18   : > { %s2506_s5 = scalar_select %p2187_p5, 1, 0 }
  0x19   : > { %s2508_s22 = scalar_select %p2191_p6, 1, 0 }
  0x1a   : > { %2507 = sst [smem:[#allocation12_spill]] %s2506_s5  ;;  %p683_p8 = scmp.lt.s32.totalorder %s2031_s27, 3 }
  0x1b   : > { %2509 = sst [smem:[#allocation13_spill]] %s2508_s22 }
  0x1c   : > { %p684_p9 = pnand %p1751_p7, %p683_p8 }
  0x1d   : > { %p785_p10 = scmp.lt.s32.totalorder (!%p684_p9), %s2170_s3, 1  ;;  %v2033_v0 = vmov (!%p684_p9), 0   ;;  %s2510_s4 = sld [smem:[#allocation19_spill]] (!%p684_p9)  ;;  %v2034_v7 = vmov (!%p684_p9), 0.0   ;;  %vm2035_vm0 = vmmov (!%p684_p9), 0   ;;  %vm851_vm1 = vcmask (!%p684_p9), 1043456  }
  0x1e   : > { %687 = sbr.rel (%p684_p9) target bundleno = 1549 (0x60d), region = 104  ;;  %1956 = vset.pattern.permute.xlu1 (!%p684_p9), %v2033_v0  ;;  %1955 = vset.pattern.permute.xlu0 (!%p684_p9), %v2033_v0  ;;  %s2511_s22 = sld [smem:[#allocation17_spill]] (!%p684_p9)  ;;  %vm847_vm2 = vcmask (!%p684_p9), 64512   ;;  %vm920_vm3 = vcmask (!%p684_p9), 130048   ;;  %v1958_v30 = vld [vmem:[%s2467_s11] sm:$0xff] (!%p684_p9)   ;;  %v1959_v31 = vld [vmem:[%s2467_s11 + $0x8] sm:$0xff] (!%p684_p9)  }
  0x1f   : > { %s2512_s5 = sld [smem:[#allocation18_spill]] (!%p684_p9)  ;;  %1833 = vmatprep.subr.bf16.mxu0 (!%p684_p9), %v2034_v7  ;;  %1839 = vmatprep.subr.bf16.mxu1 (!%p684_p9), %v2034_v7  ;;  %s2513_s26 = sld [smem:[#allocation15_spill]] (!%p684_p9)  ;;  %vm1000_vm4 = vcmask (!%p684_p9), 261120   ;;  %v1960_v51 = vld [vmem:[%s2468_s12] sm:$0xff] (!%p684_p9)   ;;  %vm1318_vm5 = vcmask (!%p684_p9), 523264   ;;  %vm1558_vm6 = vcmask (!%p684_p9), 24576  }
  0x20   : > { %1835 = vmatprep.mubr.msk.bf16.mxu0 (!%p684_p9), %vm2035_vm0, %v2034_v7  ;;  %1841 = vmatprep.mubr.msk.bf16.mxu1 (!%p684_p9), %vm2035_vm0, %v2034_v7  ;;  %v1769_v58 = vld [vmem:[%s2469_s13] ss:$0 sm:$0xff] (!%p684_p9) }
  0x25   : > { %s2199_s23 = scalar_select %p785_p10, %s2170_s3, 1 }
  0x27   : > { %s1798_s1 = sshll.u32 %s2199_s23, 4  ;;  %s2203_s24 = sshll.u32 %s2199_s23, 3 }
  0x28   : > { %s810_s30 = scalar_lea.vmem %s2510_s4, %s1798_s1  ;;  %s801_s2 = scalar_lea.vmem %s2511_s22, %s2203_s24 }
  0x29   : > { %v902_v1 = vld [vmem:[%s810_s30] sm:$0xff]  ;;  %s805_s20 = scalar_lea.vmem %s2512_s5, %s2203_s24  ;;  %v903_v3 = vld [vmem:[%s810_s30 + $0x8] sm:$0xff]  ;;  %s823_s3 = scalar_lea.vmem %s2464_s8, %s2203_s24 }
  0x2a   : > { %v837_v2 = vld [vmem:[%s801_s2] sm:$0xff]  ;;  %908 = vperm.xlu0 %1955, %v902_v1   ;;  %s814_s17 = scalar_lea.vmem %s2462_s6, %s2203_s24  ;;  %s2229_s2 = scalar_lea.vmem %s2463_s7, %s1798_s1 }
  0x2b   : > { %841 = vperm.xlu1 %1956, %v837_v2   ;;  %v1045_v4 = vld [vmem:[%s805_s20] sm:$0xff]  ;;  %s793_s27 = scalar_lea.vmem %s2513_s26, %s2203_s24  ;;  %s2241_s29 = sshll.u32 %s2199_s23, 2  ;;  %v1108_v42 = vld [vmem:[%s2229_s2 + $0x8] sm:$0xff] }
  0x2c   : > { %v964_v5 = vld [vmem:[%s823_s3] sm:$0xff]  ;;  %s827_s22 = scalar_lea.vmem %s2465_s9, %s2241_s29  ;;  %s832_s0 = scalar_lea.vmem %s2466_s10, %s2203_s24 }
  0x2d   : > { %v895_v6 = vld [vmem:[%s814_s17] sm:$0xff]  ;;  %s2515_s20 = sld [smem:[#allocation14_spill]]  ;;  %s2516_s26 = sld [smem:[#allocation16_spill]] }
  0x2e   : > { %913 = vperm.xlu0 %1955, %v903_v3   ;;  %v1107_v8 = vld [vmem:[%s2229_s2] sm:$0xff]  ;;  %s2036_s24 = smov 16   ;;  %s2037_s23 = smov 32  }
  0x2f   : > { %1048 = vperm.xlu1 %1956, %v1045_v4   ;;  %v834_v9 = vld [vmem:[%s827_s22] sm:$0xf]  ;;  %s2518_s5 = sld [smem:[#allocation6_spill]]  ;;  %s2519_s22 = sld [smem:[#allocation9_spill]] }
  0x30   : > { %v838_v10 = vunpack.c.l.bf16 %v834_v9  ;;  %v1802_v11 = vld [vmem:[%s832_s0] sm:$0xff]   ;;  %s2522_s17 = sld [smem:[#allocation22_spill]] }
  0x31   : > { %v1803_v14 = vunpack.c.l.bf16 %v1802_v11  ;;  %v1804_v16 = vunpack.c.h.bf16 %v1802_v11  ;;  %v2293_v29 = vld [vmem:[%s793_s27] sm:$0xff]  }
  0x32   : > { %967 = vperm.xlu0 %1955, %v964_v5   ;;  %v1775_v4 = vld [vmem:[%s2470_s14] ss:$0 sm:$0xff] }
  0x33   : > { %898 = vperm.xlu1 %1956, %v895_v6   ;;  %s788_s21 = scalar_lea.vmem %s2515_s20, %s2241_s29  ;;  %s797_s30 = scalar_lea.vmem %s2516_s26, %s2241_s29 }
  0x34   : > { %v2268_v24 = vld [vmem:[%s788_s21] sm:$0xf]  ;;  %s2517_s29 = sld [smem:[#allocation20_spill]] }
  0x35   : > { %v2277_v27 = vld [vmem:[%s797_s30] sm:$0xf]  ;;  %s783_s1 = sand.u32 1, %s2518_s5  }
  0x36   : > { %s784_s2 = scalar_lea.vmem [#allocation2], %s783_s1  ;;  %s1561_s26 = scalar_lea.sflag [#allocation3], %s783_s1 }
  0x37   : > { %1111 = vperm.xlu1 %1956, %v1107_v8   ;;  %s1573_s4 = sshll.u32 %s784_s2, 4  ;;  %s2416_s4 = int_to_ptr.vmem [resolvable:$true] %s1573_s4 }
  0x38   : > { %s1969_s30 = scalar_lea.vmem %s2416_s4, 16 }
  0x39   : > { %p1970_p11 = scmp.ne.s32.totalorder %s2416_s4, %s1969_s30 }
  0x3b   : > { %p1971_p12 = pnand %p1970_p11, %p2187_p5 }
  0x3d   : > { %p1972_p13 = pneg %p1971_p12 }
  0xa9   : > { %v2251_v12 = vpop.permute.xlu0 %908 }
  0xaa   : > { %v2253_v13 = vpop.permute.xlu1 %841  ;;  %v916_v20 = vmul.f32 %v1803_v14, %v2251_v12 }
  0xab   : > { %v844_v15 = vmul.f32 %v2253_v13, %v838_v10 }
  0xad   : > { %v845_v17 = vpack.c.bf16 %v844_v15, %v844_v15  ;;  %v2260_v18 = vpop.permute.xlu0 %913 }
  0xae   : > { %v2262_v19 = vpop.permute.xlu1 %1048  ;;  %v917_v21 = vmul.f32 %v1804_v16, %v2260_v18 }
  0xaf   : > { %v853_v22 = vsel %vm851_vm1, %v845_v17, 0  ;;  %v1051_v23 = vmul.f32 %v2262_v19, %v838_v10 }
  0xb0   : > { %1834 = vmatpush3.bf16.msra.mxu0 %v853_v22  ;;  %v918_v25 = vpack.c.bf16 %v917_v21, %v916_v20 }
  0xb1   : > { %v1052_v26 = vpack.c.bf16 %v1051_v23, %v1051_v23  ;;  %1845 = vmatprep.subr.bf16.mxu0 %v2034_v7  ;;  %v2307_v34 = vpop.permute.xlu0 %967  ;;  %v1964_v23 = vld [vmem:[%s2471_s15 + $0x8] sm:$0xff]  }
  0xb2   : > { %1840 = vmatpush3.bf16.msra.mxu1 %v918_v25  ;;  %v2311_v47 = vpop.permute.xlu1 %898 }
  0xb3   : > { %1836 = vmatmul.mubr.msk.bf16.vlgmr.msra.gmra.mrb[0].mxu0 %vm847_vm2, %v2268_v24  ;;  %1853 = vmatprep.subr.bf16.mxu1 %v2034_v7  ;;  %v1064_v28 = vsel %vm851_vm1, %v1052_v26, 0 }
  0xb4   : > { %1849 = vmatprep.mubr.msk.bf16.mxu0 %vm2035_vm0, %v2034_v7  ;;  %1846 = vmatpush3.bf16.msra.mxu0 %v1958_v30 }
  0xb5   : > { %1842 = vmatmul.mubr.msk.bf16.vlgmr.msra.gmra.mrb[0].mxu1 %vm920_vm3, %v2277_v27  ;;  %1847 = vmatprep.subr.bf16.mxu0 %v2034_v7 }
  0xb6   : > { %1854 = vmatpush3.bf16.msra.mxu1 %v1064_v28  ;;  %1855 = vmatprep.mubr.msk.bf16.mxu1 %vm2035_vm0, %v2034_v7  ;;  %v2322_v53 = vpop.permute.xlu1 %1111 }
  0xb7   : > { %1865 = vmatprep.subr.bf16.mxu1 %v2034_v7 }
  0xb8   : > { %1848 = vmatpush3.bf16.msra.mxu0 %v1959_v31 }
  0xb9   : > { %1859 = vmatprep.subr.bf16.mxu0 %v2034_v7 }
  0xbd   : > { %1856 = vmatmul.mubr.msk.bf16.vlgmr.msra.gmra.mrb[4].mxu1 %vm847_vm2, %v2293_v29 }
  0xbe   : > { %1867 = vmatprep.mubr.msk.bf16.mxu1 %vm2035_vm0, %v2034_v7 }
 0x186   : > { %v889_v32 = vpop.f32.mrb[0].mxu0 }
 0x187   : > { %v1837_v33 = vpop.f32.mrb[1].mxu0  ;;  %v901_v48 = vmul.f32 %v2311_v47, %v889_v32 }
 0x188   : > { %v892_v35 = vpop.f32.mrb[2].mxu0  ;;  %v958_v36 = vpop.f32.mrb[0].mxu1 }
 0x189   : > { %v1838_v37 = vpop.f32.mrb[3].mxu0  ;;  %v970_v38 = vmul.f32 %v2307_v34, %v958_v36  ;;  %v1843_v39 = vpop.f32.mrb[1].mxu1 }
 0x18a   : > { %v961_v40 = vpop.f32.mrb[2].mxu1 }
 0x18b   : > { %972 = vrot.lane.b32.xlu0 %v970_v38, %s2036_s24  ;;  %v1844_v41 = vpop.f32.mrb[3].mxu1  ;;  %s2520_s24 = sld [smem:[#allocation21_spill]] }
 0x18f   : > { %1116 = vperm.xlu0 %1955, %v1108_v42  }
 0x190   : > { %v1100_v43 = vpop.f32.mrb[4].mxu1 }
 0x191   : > { %v1857_v44 = vpop.f32.mrb[5].mxu1  ;;  %v1119_v55 = vmul.f32 %v2322_v53, %v1100_v43 }
 0x192   : > { %v1103_v45 = vpop.f32.mrb[6].mxu1 }
 0x193   : > { %v1858_v46 = vpop.f32.mrb[7].mxu1 }
 0x194   : > { %v1967_v46 = vld [vmem:[%s2475_s19] sm:$0xff]  }
 0x1fd   : > { %v973_v49 = vpop.permute.xlu0 %972 }
 0x1fe   : > { %v975_v50 = vsel %vm920_vm3, %v901_v48, %v973_v49  ;;  %v1787_v48 = vld [vmem:[%s2474_s18] ss:$0 sm:$0xff] }
 0x1ff   : > { %v976_v52 = vpack.c.bf16 %v975_v50, %v975_v50 }
 0x201   : > { %1850 = vmatmul.mubr.msk.bf16.vlgmr.msra.gmra.mrb[4].mxu0 %vm1000_vm4, %v976_v52 }
 0x202   : > { %1860 = vmatpush3.bf16.msra.mxu0 %v1960_v51  ;;  %1861 = vmatprep.mubr.msk.bf16.mxu0 %vm2035_vm0, %v2034_v7 }
 0x203   : > { %1871 = vmatprep.subr.bf16.mxu0 %v2034_v7 }
 0x20e   : > { %v2324_v54 = vpop.permute.xlu0 %1116 }
 0x20f   : > { %v1120_v56 = vmul.f32 %v2324_v54, %v1103_v45 }
 0x211   : > { %v1121_v57 = vpack.c.bf16 %v1120_v56, %v1119_v55 }
 0x213   : > { %1862 = vmatmul.mubr.msk.bf16.vlgmr.msra.gmra.mrb[8].mxu0 %vm920_vm3, %v1121_v57 }
 0x214   : > { %1873 = vmatprep.mubr.msk.bf16.mxu0 %vm2035_vm0, %v2034_v7 }
 0x2d4   : > { %v1038_v59 = vpop.f32.mrb[4].mxu0 }
 0x2d5   : > { %v1039_v60 = vadd.f32 %v1769_v58, %v1038_v59  ;;  %v1851_v61 = vpop.f32.mrb[5].mxu0  ;;  %v1780_v59 = vld [vmem:[%s2517_s29] ss:$0 sm:$0xff]  ;;  %s2038_s29 = smov [#allocation2]  }
 0x2d6   : > { %v1041_v62 = vpop.f32.mrb[6].mxu0  ;;  %s1973_s5 = sshll.u32 %s2038_s29, 4  ;;  %s1974_s5 = int_to_ptr.vmem [resolvable:$false] %s1973_s5 }
 0x2d7   : > { %v1044_v63 = vmax.f32 %v1039_v60, 0.0  ;;  %v1852_v0 = vpop.f32.mrb[7].mxu0  ;;  %p1976_p0 = scmp.lt.s32.totalorder %s2416_s4, %s1974_s5 }
 0x2d9   : > { %v1183_v1 = vmul.f32 %v1044_v63, %v2253_v13  ;;  %v1362_v15 = vmul.f32 %v2262_v19, %v1044_v63  ;;  %v1963_v19 = vld [vmem:[%s2471_s15] sm:$0xff]  }
 0x2db   : > { %v1184_v2 = vpack.c.bf16 %v1183_v1, %v1183_v1  ;;  %v1363_v21 = vpack.c.bf16 %v1362_v15, %v1362_v15 }
 0x2dd   : > { %v1186_v3 = vsel %vm851_vm1, %v1184_v2, 0  ;;  %v1365_v22 = vsel %vm851_vm1, %v1363_v21, 0 }
 0x2de   : > { %1866 = vmatpush3.bf16.msra.mxu1 %v1186_v3 }
 0x2df   : > { %1877 = vmatprep.subr.bf16.mxu1 %v2034_v7 }
 0x2e1   : > { %1868 = vmatmul.mubr.msk.bf16.vlgmr.msra.gmra.mrb[8].mxu1 %vm847_vm2, %v2268_v24  ;;  %v1965_v24 = vld [vmem:[%s2471_s15 + $0x10] sm:$0xff]  }
 0x2e2   : > { %1885 = vmatprep.mubr.msk.bf16.mxu1 %vm2035_vm0, %v2034_v7  ;;  %1878 = vmatpush3.bf16.msra.mxu1 %v1963_v19 }
 0x2e3   : > { %1879 = vmatprep.subr.bf16.mxu1 %v2034_v7 }
 0x2e6   : > { %v1174_v5 = vpop.f32.mrb[8].mxu0  ;;  %1880 = vmatpush3.bf16.msra.mxu1 %v1964_v23 }
 0x2e7   : > { %v1175_v6 = vadd.f32 %v1775_v4, %v1174_v5  ;;  %v1863_v8 = vpop.f32.mrb[9].mxu0  ;;  %1881 = vmatprep.subr.bf16.mxu1 %v2034_v7 }
 0x2e8   : > { %v1177_v9 = vpop.f32.mrb[10].mxu0 }
 0x2e9   : > { %v1181_v10 = vmax.f32 %v1175_v6, 0.0  ;;  %v1178_v11 = vadd.f32 %v1775_v4, %v1177_v9  ;;  %v1864_v13 = vpop.f32.mrb[11].mxu0 }
 0x2ea   : > { %1882 = vmatpush3.bf16.msra.mxu1 %v1965_v24 }
 0x2eb   : > { %v1182_v14 = vmax.f32 %v1178_v11, 0.0  ;;  %v1229_v16 = vmul.f32 %v1181_v10, %v2251_v12  ;;  %v1961_v12 = vld [vmem:[%s2472_s16] sm:$0xff]   ;;  %1883 = vmatprep.subr.bf16.mxu1 %v2034_v7 }
 0x2ed   : > { %v1230_v17 = vmul.f32 %v1182_v14, %v2260_v18  ;;  %v1962_v18 = vld [vmem:[%s2472_s16 + $0x8] sm:$0xff]  }
 0x2ef   : > { %v1231_v20 = vpack.c.bf16 %v1230_v17, %v1229_v16 }
 0x2f1   : > { %1872 = vmatpush3.bf16.msra.mxu0 %v1231_v20  ;;  %v1502_v20 = vld [vmem:[%s2520_s24] sm:$0x1] }
 0x2f2   : > { %1889 = vmatprep.subr.bf16.mxu0 %v2034_v7 }
 0x2f4   : > { %1874 = vmatmul.mubr.msk.bf16.vlgmr.msra.gmra.mrb[12].mxu0 %vm920_vm3, %v2277_v27 }
 0x2f5   : > { %1890 = vmatpush3.bf16.msra.mxu0 %v1365_v22  ;;  %1891 = vmatprep.mubr.msk.bf16.mxu0 %vm2035_vm0, %v2034_v7 }
 0x2f6   : > { %1895 = vmatprep.subr.bf16.mxu0 %v2034_v7 }
 0x2fc   : > { %1892 = vmatmul.mubr.msk.bf16.vlgmr.msra.gmra.mrb[16].mxu0 %vm847_vm2, %v2293_v29  ;;  %v1966_v29 = vld [vmem:[%s2471_s15 + $0x18] sm:$0xff]  }
 0x2fd   : > { %1899 = vmatprep.mubr.msk.bf16.mxu0 %vm2035_vm0, %v2034_v7  ;;  %1896 = vmatpush3.bf16.msra.mxu0 %v1961_v12 }
 0x2fe   : > { %1897 = vmatprep.subr.bf16.mxu0 %v2034_v7  ;;  %1884 = vmatpush3.bf16.msra.mxu1 %v1966_v29 }
 0x2ff   : > { %1903 = vmatprep.subr.bf16.mxu1 %v2034_v7 }
 0x301   : > { %1898 = vmatpush3.bf16.msra.mxu0 %v1962_v18 }
 0x3b4   : > { %v1222_v25 = vpop.f32.mrb[8].mxu1 }
 0x3b5   : > { %v1869_v26 = vpop.f32.mrb[9].mxu1  ;;  %v1228_v43 = vmul.f32 %v1222_v25, %v2311_v47  ;;  %v1968_v47 = vld [vmem:[%s2475_s19 + $0x8] sm:$0xff]  }
 0x3b6   : > { %v1225_v27 = vpop.f32.mrb[10].mxu1 }
 0x3b7   : > { %v1870_v28 = vpop.f32.mrb[11].mxu1 }
 0x3c7   : > { %v1266_v30 = vpop.f32.mrb[12].mxu0 }
 0x3c8   : > { %v1272_v31 = vmul.f32 %v1266_v30, %v2307_v34  ;;  %v1875_v32 = vpop.f32.mrb[13].mxu0 }
 0x3c9   : > { %v1269_v33 = vpop.f32.mrb[14].mxu0 }
 0x3ca   : > { %1274 = vrot.lane.b32.xlu1 %v1272_v31, %s2037_s23  ;;  %v1876_v35 = vpop.f32.mrb[15].mxu0  ;;  %s1794_s23 = sshll.u32 %s2519_s22, 4  ;;  %s1975_s22 = scalar_lea.vmem %s1974_s5, 32 }
 0x3cb   : > { %s2414_s25 = scalar_lea.hbm %s2522_s17, %s1794_s23  ;;  %p1977_p1 = scmp.lt.s32.totalorder %s1975_s22, %s1969_s30 }
 0x3cd   : > { %p1978_p2 = por %p1977_p1, %p1976_p0 }
 0x3cf   : > { %v1401_v36 = vpop.f32.mrb[16].mxu0  ;;  %p1979_p3 = pnand %p1978_p2, %p1972_p13 }
 0x3d0   : > { %v1893_v37 = vpop.f32.mrb[17].mxu0  ;;  %v1408_v39 = vmul.f32 %v1401_v36, %v2322_v53 }
 0x3d1   : > { %v1404_v38 = vpop.f32.mrb[18].mxu0 }
 0x3d2   : > { %v1409_v40 = vmul.f32 %v1404_v38, %v2324_v54  ;;  %v1894_v41 = vpop.f32.mrb[19].mxu0 }
 0x3d4   : > { %v1410_v42 = vpack.c.bf16 %v1409_v40, %v1408_v39 }
 0x3d6   : > { %1900 = vmatmul.mubr.msk.bf16.vlgmr.msra.gmra.mrb[20].mxu0 %vm1000_vm4, %v1410_v42 }
 0x43c   : > { %v1275_v44 = vpop.permute.xlu1 %1274 }
 0x43d   : > { %v1277_v34 = vsel %vm1000_vm4, %v1228_v43, %v1275_v44 }
 0x43e   : > { %v1278_v45 = vpack.c.bf16 %v1277_v34, %v1277_v34 }
 0x440   : > { %1886 = vmatmul.mubr.msk.bf16.vlgmr.msra.gmra.mrb[12].mxu1 %vm1318_vm5, %v1278_v45 }
 0x441   : > { %1907 = vmatprep.mubr.msk.bf16.mxu1 %vm2035_vm0, %v2034_v7  ;;  %1904 = vmatpush3.bf16.msra.mxu1 %v1967_v46 }
 0x442   : > { %1905 = vmatprep.subr.bf16.mxu1 %v2034_v7 }
 0x445   : > { %1906 = vmatpush3.bf16.msra.mxu1 %v1968_v47 }
 0x4a9   : > { %v1471_v49 = vpop.f32.mrb[20].mxu0 }
 0x4aa   : > { %v1472_v50 = vadd.f32 %v1787_v48, %v1471_v49  ;;  %v1901_v51 = vpop.f32.mrb[21].mxu0 }
 0x4ab   : > { %v1474_v52 = vpop.f32.mrb[22].mxu0 }
 0x4ac   : > { %v1475_v53 = vadd.f32 %v1787_v48, %v1474_v52  ;;  %v1902_v54 = vpop.f32.mrb[23].mxu0  ;;  %v1486_v55 = vsel %vm1000_vm4, %v1472_v50, 0.0 }
 0x4ae   : > { %v1487_v56 = vsel %vm1000_vm4, %v1475_v53, 0.0 }
 0x4af   : > { %v1488_v7 = vadd.f32 %v1487_v56, %v1486_v55 }
 0x4b1   : > { %v1489_v57 = vrot.slane %v1488_v7, 4 }
 0x4b3   : > { %v1490_v58 = vadd.f32 %v1489_v57, %v1488_v7 }
 0x4b5   : > { %v1491_v60 = vrot.slane %v1490_v58, 2 }
 0x4b7   : > { %v1492_v3 = vadd.f32 %v1491_v60, %v1490_v58 }
 0x4b9   : > { %v1493_v6 = vrot.slane %v1492_v3, 1 }
 0x4bb   : > { %v1494_v10 = vadd.f32 %v1493_v6, %v1492_v3 }
 0x4bd   : > { %v1495_v14 = vmul.f32 0.0625, %v1494_v10 }
 0x513   : > { %v1356_v61 = vpop.f32.mrb[12].mxu1 }
 0x514   : > { %v1357_v62 = vadd.f32 %v1780_v59, %v1356_v61  ;;  %v1887_v63 = vpop.f32.mrb[13].mxu1 }
 0x515   : > { %v1359_v0 = vpop.f32.mrb[14].mxu1 }
 0x516   : > { %v1478_v1 = vsel %vm1000_vm4, %v1357_v62, 0.0  ;;  %v1888_v2 = vpop.f32.mrb[15].mxu1 }
 0x517   : > { %v1479_v4 = vrot.slane %v1478_v1, 4 }
 0x519   : > { %v1480_v5 = vadd.f32 %v1479_v4, %v1478_v1 }
 0x51b   : > { %v1481_v8 = vrot.slane %v1480_v5, 2 }
 0x51d   : > { %v1482_v9 = vadd.f32 %v1481_v8, %v1480_v5 }
 0x51f   : > { %v1483_v11 = vrot.slane %v1482_v9, 1 }
 0x521   : > { %v1484_v13 = vadd.f32 %v1483_v11, %v1482_v9 }
 0x523   : > { %v1485_v15 = vmul.f32 0.125, %v1484_v13 }
 0x525   : > { %v1496_v16 = vadd.f32 %v1495_v14, %v1485_v15 }
 0x527   : > { %v1497_v17 = vpack.c.bf16 %v1496_v16, %v1496_v16 }
 0x529   : > { %1908 = vmatmul.mubr.msk.bf16.vlgmr.msra.gmra.mrb[16].mxu1 %vm1000_vm4, %v1497_v17 }
 0x5fc   : > { %v1552_v21 = vpop.f32.mrb[16].mxu1 }
 0x5fd   : > { %v1553_v22 = vadd.f32 %v1552_v21, %v1502_v20  ;;  %v1909_v12 = vpop.f32.mrb[17].mxu1 }
 0x5fe   : > { %v1555_v18 = vpop.f32.mrb[18].mxu1 }
 0x5ff   : > { %v1910_v19 = vpop.f32.mrb[19].mxu1  ;;  %1559 = vst.msk [vmem:[%s784_s2] sm:$0x1] %vm1558_vm6, %v1553_v22 }
 0x600   : > { %1982 = shalt.err (!%p1979_p3)
}
 0x601   : > { %s1983_s1 = scalar_lea.hbm %s2414_s25, 16  ;;  %s1987_s24 = scalar_lea.hbm %s2522_s17, 32 }
 0x602   : > { %p1984_p4 = scmp.ne.s32.totalorder %s2414_s25, %s1983_s1  ;;  %p1988_p9 = scmp.lt.u32.totalorder %s2414_s25, %s2522_s17 }
 0x603   : > { %p1989_p10 = scmp.lt.u32.totalorder %s1987_s24, %s1983_s1  ;;  %p1991_p12 = scmp.lt.u32.totalorder %s1983_s1, %s2414_s25 }
 0x604   : > { %p1985_p7 = pnand %p1984_p4, %p2187_p5 }
 0x605   : > { %p1990_p11 = por %p1989_p10, %p1988_p9 }
 0x606   : > { %p1986_p8 = pneg %p1985_p7 }
 0x607   : > { %p1992_p13 = por %p1991_p12, %p1990_p11 }
 0x609   : > { %p1993_p0 = pnand %p1992_p13, %p1986_p8 }
 0x60b   : > { %1996 = shalt.err (!%p1993_p0)
}
 0x60c   : > { %1911 = dma.vmem_to_hbm [thread:$0]  (%p2187_p5), %s2416_s4, 16, %s2414_s25, %s1561_s26  }
 0x60d PF: > { %s2523_s20 = sld [smem:[#allocation8_spill]]  ;;  %s2524_s21 = sld [smem:[#allocation5_spill]] }
 0x613   : > { %p1917_p1 = scmp.ge.s32.totalorder %s2523_s20, 2  ;;  %s1585_s29 = sand.u32 1, %s2524_s21  }
 0x614   : > { %s1586_s5 = scalar_lea.sflag [#allocation3], %s1585_s29 }
 0x615   : > { %p1914_p2 = pnand %p1917_p1, %p2191_p6 }
 0x617   : > { %2014 = dma.done.wait (!%p1914_p2), %s1586_s5, 16  }
 0x618   : > { %2016 = vsyncadd (!%p1914_p2), %s1586_s5, 4294967280  ;;  %s2526_s27 = sld [smem:[#allocation10_spill]]  ;;  %s2527_s2 = sld [smem:[#allocation6_spill]] }
 0x619   : > { %s2528_s25 = sld [smem:[#allocation7_spill]]  ;;  %s2529_s26 = sld [smem:[#allocation11_spill]] }
 0x61e   : > { %p31_p3 = scmp.ge.s32.totalorder %s2526_s27, 4  }
 0x620   :  { %33 = sbr.rel (!%p31_p3) target bundleno = 13 (0xd), region = 169 }
 0x627   :  { %1590 = vsyncpa [#allocation3], 1 }
 0x628   :  { %1592 = vsyncpa [#allocation3 + $0x1], 1 }

</bundles_post_ra>
